<compile_context>
chip_gen: v7x
topology: tpu7x:2x2x1
jax: 0.10.0
libtpu: 0.0.40
codegen_flags: <defaults>
</compile_context>

<pallas_src>
import functools

import jax
import jax.numpy as jnp
from jax.experimental import pallas as pl
from jax.experimental.pallas import tpu as pltpu

H1 = 512
H2 = 256
OUT_PAD = 128          # lane-dense padded width of the final layer
DEFAULT_TILE_B = 128   # fills MXU rows on all generations
LARGE_TILE_B = 512     # used for big training batches (>= 4 * LARGE_TILE_B)


def _round_up(n, m):
    return ((n + m - 1) // m) * m


def _choose_tile_b(batch):
    """Batch-adaptive tile size (all values are multiples of 16)."""
    if batch < DEFAULT_TILE_B:
        # Small RL inference batches: don't pad 4 -> 128.
        return _round_up(batch, 16)
    if batch >= 4 * LARGE_TILE_B:
        # Big training batches: shrink the grid (less per-step overhead).
        return LARGE_TILE_B
    # Mid-size: make sure grid >= 2 so v7x's two TensorCores both get work.
    half = _round_up(_round_up(batch, 16) // 2, 16)
    return min(DEFAULT_TILE_B, half)


def _policy_net_kernel(x_ref, w1_ref, b1_ref, w2_ref, b2_ref, w3_ref, b3_ref,
                       out_ref):
    # Layer 1: tiny (<1% of total FLOPs) -> keep x and W1 in f32 for accuracy.
    h1f = jnp.dot(x_ref[...], w1_ref[...], preferred_element_type=jnp.float32)
    # Bias add + relu in f32, single cast -> only the bf16 copy of h1 lives on.
    h1 = jnp.maximum(h1f + b1_ref[...], 0.0).astype(jnp.bfloat16)   # (TB, 512)
    h2f = jnp.dot(h1, w2_ref[...], preferred_element_type=jnp.float32)
    h2 = jnp.maximum(h2f + b2_ref[...], 0.0).astype(jnp.bfloat16)   # (TB, 256)
    a = jnp.dot(h2, w3_ref[...], preferred_element_type=jnp.float32)
    out_ref[...] = jnp.tanh(a + b3_ref[...])                        # (TB, 128)


@functools.partial(jax.jit, static_argnames=("action_dim",))
def actor_forward(x, params, action_dim):
    """Actor (PolicyNet) forward pass as a single Pallas kernel.

    x: (batch, state_dim) float32
    params: dict from make_actor_params (f32 W1, bf16 W2/W3, f32 biases,
            final layer zero-padded to OUT_PAD columns).
    action_dim: static python int.
    Returns (batch, action_dim) float32 actions in [-1, 1].
    """
    batch, state_dim = x.shape
    tile_b = _choose_tile_b(batch)

    padded_b = _round_up(batch, tile_b)
    if padded_b != batch:
        x = jnp.pad(x, ((0, padded_b - batch), (0, 0)))
    grid = (padded_b // tile_b,)

    out = pl.pallas_call(
        _policy_net_kernel,
        out_shape=jax.ShapeDtypeStruct((padded_b, OUT_PAD), jnp.float32),
        grid_spec=pltpu.PrefetchScalarGridSpec(
            num_scalar_prefetch=0,
            grid=grid,
            in_specs=[
                # Activations: tiled over batch.
                pl.BlockSpec((tile_b, state_dim), lambda i: (i, 0)),
                # Weights / biases: same block every step -> VMEM-resident,
                # DMA'd from HBM only once.
                pl.BlockSpec((state_dim, H1), lambda i: (0, 0)),
                pl.BlockSpec((1, H1), lambda i: (0, 0)),
                pl.BlockSpec((H1, H2), lambda i: (0, 0)),
                pl.BlockSpec((1, H2), lambda i: (0, 0)),
                pl.BlockSpec((H2, OUT_PAD), lambda i: (0, 0)),
                pl.BlockSpec((1, OUT_PAD), lambda i: (0, 0)),
            ],
            out_specs=pl.BlockSpec((tile_b, OUT_PAD), lambda i: (i, 0)),
        ),
        compiler_params=pltpu.CompilerParams(
            dimension_semantics=("parallel",)),
    )(x, params["w1"], params["b1"], params["w2"], params["b2"],
      params["w3"], params["b3"])

    return out[:batch, :action_dim]


def norm_col_init_t(key, in_dim, out_dim, std=1.0):
    """norm_col_init, but for weights stored as (in, out).

    PyTorch draws N(0,1) of shape (out, in) and normalizes each row (over the
    `in` axis) to norm `std`.  Here the `in` axis is axis 0.
    """
    w = jax.random.normal(key, (in_dim, out_dim), dtype=jnp.float32)
    w = w * (std / jnp.sqrt(jnp.sum(w * w, axis=0, keepdims=True)))
    return w


def make_actor_params(key, state_dim, action_dim):
    k1, k2, k3, kb1, kb2, kb3 = jax.random.split(key, 6)

    # Biases follow nn.Linear's default U(-1/sqrt(fan_in), 1/sqrt(fan_in)).
    def bias(k, fan_in, n):
        bound = 1.0 / jnp.sqrt(jnp.float32(fan_in))
        return jax.random.uniform(k, (1, n), jnp.float32, -bound, bound)

    w3 = norm_col_init_t(k3, H2, action_dim, 1.0)
    b3 = bias(kb3, H2, action_dim)
    # Zero-pad the final layer to OUT_PAD columns for lane-dense stores.
    w3p = jnp.zeros((H2, OUT_PAD), jnp.float32).at[:, :action_dim].set(w3)
    b3p = jnp.zeros((1, OUT_PAD), jnp.float32).at[:, :action_dim].set(b3)

    return {
        # Layer 1 kept in f32 (negligible FLOPs, better accuracy on raw states).
        "w1": norm_col_init_t(k1, state_dim, H1, 1.0),
        "b1": bias(kb1, state_dim, H1),
        "w2": norm_col_init_t(k2, H1, H2, 1.0).astype(jnp.bfloat16),
        "b2": bias(kb2, H1, H2),
        "w3": w3p.astype(jnp.bfloat16),
        "b3": b3p,
    }


def actor_reference(x, p, action_dim):
    """Pure-JAX reference mirroring the kernel's bf16-operand / f32-accum math."""
    w1 = p["w1"]
    w2 = p["w2"].astype(jnp.float32)
    w3 = p["w3"].astype(jnp.float32)
    h1 = jnp.maximum(x @ w1 + p["b1"], 0.0)
    h1 = h1.astype(jnp.bfloat16).astype(jnp.float32)
    h2 = jnp.maximum(h1 @ w2 + p["b2"], 0.0)
    h2 = h2.astype(jnp.bfloat16).astype(jnp.float32)
    a = jnp.tanh(h2 @ w3 + p["b3"])
    return a[:, :action_dim]


if __name__ == "__main__":
    key = jax.random.PRNGKey(0)
    k_params, k_state1, k_state2 = jax.random.split(key, 3)

    state_dim, action_dim = 32, 8
    params = make_actor_params(k_params, state_dim, action_dim)

    # Small RL-style batch (tile_b=16, grid=1, no pad needed past 16 rows).
    batch = 4
    state = jax.random.normal(k_state1, (batch, state_dim), dtype=jnp.float32)
    action = jax.block_until_ready(actor_forward(state, params, action_dim))
    ref = actor_reference(state, params, action_dim)
    assert action.shape == (batch, action_dim)
    assert jnp.allclose(action, ref, atol=2e-3, rtol=2e-3), (
        float(jnp.max(jnp.abs(action - ref))))
    assert bool(jnp.all(jnp.abs(action) <= 1.0))

    # Mid-size batch exercising grid >= 2 (v7x megacore path) and batch padding.
    batch2 = 144
    state2 = jax.random.normal(k_state2, (batch2, state_dim), dtype=jnp.float32)
    action2 = jax.block_until_ready(actor_forward(state2, params, action_dim))
    ref2 = actor_reference(state2, params, action_dim)
    assert action2.shape == (batch2, action_dim)
    assert jnp.allclose(action2, ref2, atol=2e-3, rtol=2e-3), (
        float(jnp.max(jnp.abs(action2 - ref2))))

    print("KERNEL_OK")
</pallas_src>

<mosaic_0001>
module attributes {stable_mosaic.version = 11 : i64} {
  func.func @_policy_net_kernel(%arg0: i32, %arg1: memref<16x32xf32, #tpu.memory_space<vmem>>, %arg2: memref<32x512xf32, #tpu.memory_space<vmem>>, %arg3: memref<1x512xf32, #tpu.memory_space<vmem>>, %arg4: memref<512x256xbf16, #tpu.memory_space<vmem>>, %arg5: memref<1x256xf32, #tpu.memory_space<vmem>>, %arg6: memref<256x128xbf16, #tpu.memory_space<vmem>>, %arg7: memref<1x128xf32, #tpu.memory_space<vmem>>, %arg8: memref<16x128xf32, #tpu.memory_space<vmem>>) attributes {dimension_semantics = [#tpu.dimension_semantics<parallel>], iteration_bounds = array<i64: 1>, scalar_prefetch = 0 : i64, scratch_operands = 0 : i64, tpu.core_type = #tpu.core_type<tc>, window_params = [{transform_indices = @transform_0, window_bounds = array<i64: 16, 32>}, {pipeline_mode = #tpu.pipeline_mode<synchronous>, transform_indices = @transform_1, window_bounds = array<i64: 32, 512>}, {pipeline_mode = #tpu.pipeline_mode<synchronous>, transform_indices = @transform_2, window_bounds = array<i64: 1, 512>}, {pipeline_mode = #tpu.pipeline_mode<synchronous>, transform_indices = @transform_3, window_bounds = array<i64: 512, 256>}, {pipeline_mode = #tpu.pipeline_mode<synchronous>, transform_indices = @transform_4, window_bounds = array<i64: 1, 256>}, {pipeline_mode = #tpu.pipeline_mode<synchronous>, transform_indices = @transform_5, window_bounds = array<i64: 256, 128>}, {pipeline_mode = #tpu.pipeline_mode<synchronous>, transform_indices = @transform_6, window_bounds = array<i64: 1, 128>}, {transform_indices = @transform_7, window_bounds = array<i64: 16, 128>}]} {
    %c0 = arith.constant 0 : index
    %c0_0 = arith.constant 0 : index
    %0 = vector.load %arg1[%c0, %c0_0] : memref<16x32xf32, #tpu.memory_space<vmem>>, vector<16x32xf32>
    %c0_1 = arith.constant 0 : index
    %c0_2 = arith.constant 0 : index
    %1 = vector.load %arg2[%c0_1, %c0_2] : memref<32x512xf32, #tpu.memory_space<vmem>>, vector<32x512xf32>
    %cst = arith.constant dense<0.000000e+00> : vector<16x512xf32>
    %2 = tpu.matmul %0, %1, %cst {dimension_numbers = #tpu.dot_dimension_numbers<[1], [0], [0], [1], [0, 0, 1, 1], [], []>} : vector<16x32xf32>, vector<32x512xf32>, vector<16x512xf32> -> vector<16x512xf32>
    %c0_3 = arith.constant 0 : index
    %c0_4 = arith.constant 0 : index
    %3 = vector.load %arg3[%c0_3, %c0_4] : memref<1x512xf32, #tpu.memory_space<vmem>>, vector<1x512xf32>
    %4 = vector.broadcast %3 : vector<1x512xf32> to vector<16x512xf32>
    %5 = arith.addf %2, %4 : vector<16x512xf32>
    %cst_5 = arith.constant 0.000000e+00 : f32
    %6 = vector.broadcast %cst_5 : f32 to vector<16x512xf32>
    %7 = arith.maximumf %5, %6 : vector<16x512xf32>
    %8 = arith.truncf %7 : vector<16x512xf32> to vector<16x512xbf16>
    %c0_6 = arith.constant 0 : index
    %c0_7 = arith.constant 0 : index
    %9 = vector.load %arg4[%c0_6, %c0_7] : memref<512x256xbf16, #tpu.memory_space<vmem>>, vector<512x256xbf16>
    %cst_8 = arith.constant dense<0.000000e+00> : vector<16x256xf32>
    %10 = tpu.matmul %8, %9, %cst_8 {dimension_numbers = #tpu.dot_dimension_numbers<[1], [0], [0], [1], [0, 0, 1, 1], [], []>} : vector<16x512xbf16>, vector<512x256xbf16>, vector<16x256xf32> -> vector<16x256xf32>
    %c0_9 = arith.constant 0 : index
    %c0_10 = arith.constant 0 : index
    %11 = vector.load %arg5[%c0_9, %c0_10] : memref<1x256xf32, #tpu.memory_space<vmem>>, vector<1x256xf32>
    %12 = vector.broadcast %11 : vector<1x256xf32> to vector<16x256xf32>
    %13 = arith.addf %10, %12 : vector<16x256xf32>
    %cst_11 = arith.constant 0.000000e+00 : f32
    %14 = vector.broadcast %cst_11 : f32 to vector<16x256xf32>
    %15 = arith.maximumf %13, %14 : vector<16x256xf32>
    %16 = arith.truncf %15 : vector<16x256xf32> to vector<16x256xbf16>
    %c0_12 = arith.constant 0 : index
    %c0_13 = arith.constant 0 : index
    %17 = vector.load %arg6[%c0_12, %c0_13] : memref<256x128xbf16, #tpu.memory_space<vmem>>, vector<256x128xbf16>
    %cst_14 = arith.constant dense<0.000000e+00> : vector<16x128xf32>
    %18 = tpu.matmul %16, %17, %cst_14 {dimension_numbers = #tpu.dot_dimension_numbers<[1], [0], [0], [1], [0, 0, 1, 1], [], []>} : vector<16x256xbf16>, vector<256x128xbf16>, vector<16x128xf32> -> vector<16x128xf32>
    %c0_15 = arith.constant 0 : index
    %c0_16 = arith.constant 0 : index
    %19 = vector.load %arg7[%c0_15, %c0_16] : memref<1x128xf32, #tpu.memory_space<vmem>>, vector<1x128xf32>
    %20 = vector.broadcast %19 : vector<1x128xf32> to vector<16x128xf32>
    %21 = arith.addf %18, %20 : vector<16x128xf32>
    %22 = math.tanh %21 : vector<16x128xf32>
    %c0_17 = arith.constant 0 : index
    %c0_18 = arith.constant 0 : index
    %23 = vector.load %arg8[%c0_17, %c0_18] : memref<16x128xf32, #tpu.memory_space<vmem>>, vector<16x128xf32>
    tpu.vector_store %arg8[%c0_17, %c0_18], %22 {strides = array<i32>} : memref<16x128xf32, #tpu.memory_space<vmem>>, vector<16x128xf32>,
    return
  }
  func.func @transform_0(%arg0: i32) -> (i32, i32) {
    %c0_i32 = arith.constant 0 : i32
    %c0_i32_0 = arith.constant 0 : i32
    return %arg0, %c0_i32 : i32, i32
  }
  func.func @transform_1(%arg0: i32) -> (i32, i32) {
    %c0_i32 = arith.constant 0 : i32
    %c0_i32_0 = arith.constant 0 : i32
    %c0_i32_1 = arith.constant 0 : i32
    return %c0_i32, %c0_i32_0 : i32, i32
  }
  func.func @transform_2(%arg0: i32) -> (i32, i32) {
    %c0_i32 = arith.constant 0 : i32
    %c0_i32_0 = arith.constant 0 : i32
    %c0_i32_1 = arith.constant 0 : i32
    return %c0_i32, %c0_i32_0 : i32, i32
  }
  func.func @transform_3(%arg0: i32) -> (i32, i32) {
    %c0_i32 = arith.constant 0 : i32
    %c0_i32_0 = arith.constant 0 : i32
    %c0_i32_1 = arith.constant 0 : i32
    return %c0_i32, %c0_i32_0 : i32, i32
  }
  func.func @transform_4(%arg0: i32) -> (i32, i32) {
    %c0_i32 = arith.constant 0 : i32
    %c0_i32_0 = arith.constant 0 : i32
    %c0_i32_1 = arith.constant 0 : i32
    return %c0_i32, %c0_i32_0 : i32, i32
  }
  func.func @transform_5(%arg0: i32) -> (i32, i32) {
    %c0_i32 = arith.constant 0 : i32
    %c0_i32_0 = arith.constant 0 : i32
    %c0_i32_1 = arith.constant 0 : i32
    return %c0_i32, %c0_i32_0 : i32, i32
  }
  func.func @transform_6(%arg0: i32) -> (i32, i32) {
    %c0_i32 = arith.constant 0 : i32
    %c0_i32_0 = arith.constant 0 : i32
    %c0_i32_1 = arith.constant 0 : i32
    return %c0_i32, %c0_i32_0 : i32, i32
  }
  func.func @transform_7(%arg0: i32) -> (i32, i32) {
    %c0_i32 = arith.constant 0 : i32
    %c0_i32_0 = arith.constant 0 : i32
    return %arg0, %c0_i32 : i32, i32
  }
}

</mosaic_0001>

<bundles_post_ra>
// kernel: actor_forward.1
= control target key start
LH: loop header
LB: loop body
LE: loop exit
PB: predicated region body
PF: predicated region fallthrough
CT: control target
= control target key end

     0   :  { %12 = vsyncpa [#allocation3], 0  ;;  %s1407_s0 = inlined_call_operand.vmem [shape: f32[16,32], index: 0, kind: input, shape index: {}]   ;;  %s1408_s1 = inlined_call_operand.hbm [shape: f32[32,512], index: 1, kind: input, shape index: {}]   ;;  %s1409_s2 = inlined_call_operand.vmem [shape: f32[1,512], index: 2, kind: input, shape index: {}]   ;;  %s1410_s3 = inlined_call_operand.hbm [shape: bf16[512,256], index: 3, kind: input, shape index: {}]   ;;  %s1411_s4 = inlined_call_operand.vmem [shape: f32[1,256], index: 4, kind: input, shape index: {}]   ;;  %s1412_s5 = inlined_call_operand.hbm [shape: bf16[256,128], index: 5, kind: input, shape index: {}]   ;;  %s1413_s6 = inlined_call_operand.vmem [shape: f32[1,128], index: 6, kind: input, shape index: {}]   ;;  %s1414_s7 = inlined_call_operand.vmem [shape: f32[16,128], index: 7, kind: output, shape index: {}]  }
   0x1   :  { %13 = vsyncpa [#allocation5], 0  ;;  %s1282_s24 = smov [#allocation4]   ;;  %s1212_s28 = scalar_lea.hbm %s1410_s3, 8192 }
   0x2   :  { %s35_s25 = sshll.u32 %s1282_s24, 4  ;;  %p1213_p0 = scmp.ne.s32.totalorder %s1410_s3, %s1212_s28  ;;  %s36_s25 = int_to_ptr.vmem [resolvable:$true] %s35_s25 }
   0x3   :  { %p1216_p1 = scmp.lt.u32.totalorder %s1212_s28, %s1410_s3 }
   0x5   :  { %p1218_p2 = pnand %p1216_p1, %p1213_p0 }
   0x7   :  { %1221 = shalt.err (!%p1218_p2)
}
   0x8   :  { %s1222_s10 = scalar_lea.vmem %s36_s25, 8192  ;;  %p1227_p4 = scmp.lt.s32.totalorder %s36_s25, %s36_s25 }
   0x9   :  { %p1223_p3 = scmp.ne.s32.totalorder %s36_s25, %s1222_s10  ;;  %p1228_p5 = scmp.lt.s32.totalorder %s1222_s10, %s1222_s10 }
   0xb   :  { %p1229_p6 = por %p1228_p5, %p1227_p4 }
   0xd   :  { %p1230_p7 = pnand %p1229_p6, %p1223_p3 }
   0xf   :  { %1233 = shalt.err (!%p1230_p7)
}
  0x10   :  { %s1283_s11 = smov 128   ;;  %s1284_s12 = smov 8  }
  0x11   :  { %41 = dma.hbm_to_vmem [thread:$0]  %s1410_s3, 8192, %s36_s25, [#allocation5], %s1283_s11, %s1283_s11, %s1284_s12  }
  0x12   :  { %s1285_s15 = smov [#allocation2]   ;;  %s1234_s19 = scalar_lea.hbm %s1408_s1, 2048 }
  0x13   :  { %s21_s16 = sshll.u32 %s1285_s15, 4  ;;  %p1235_p8 = scmp.ne.s32.totalorder %s1408_s1, %s1234_s19  ;;  %s22_s16 = int_to_ptr.vmem [resolvable:$true] %s21_s16 }
  0x14   :  { %p1238_p9 = scmp.lt.u32.totalorder %s1234_s19, %s1408_s1 }
  0x16   :  { %p1240_p10 = pnand %p1238_p9, %p1235_p8 }
  0x18   :  { %1243 = shalt.err (!%p1240_p10)
}
  0x19   :  { %s1244_s24 = scalar_lea.vmem %s22_s16, 2048  ;;  %p1249_p12 = scmp.lt.s32.totalorder %s22_s16, %s22_s16 }
  0x1a   :  { %p1245_p11 = scmp.ne.s32.totalorder %s22_s16, %s1244_s24  ;;  %p1250_p13 = scmp.lt.s32.totalorder %s1244_s24, %s1244_s24 }
  0x1c   :  { %p1251_p0 = por %p1250_p13, %p1249_p12 }
  0x1e   :  { %p1252_p1 = pnand %p1251_p0, %p1245_p11 }
  0x20   :  { %1255 = shalt.err (!%p1252_p1)
}
  0x21   :  { %s1286_s3 = smov 512   ;;  %s1287_s25 = smov 32  }
  0x22   :  { %27 = dma.hbm_to_vmem [thread:$0]  %s1408_s1, 2048, %s22_s16, [#allocation3], %s1286_s3, %s1286_s3, %s1287_s25  }
  0x23   :  { %s1288_s28 = smov [#allocation6]   ;;  %s1256_s9 = scalar_lea.hbm %s1412_s5, 2048 }
  0x24   :  { %s49_s29 = sshll.u32 %s1288_s28, 4  ;;  %p1257_p2 = scmp.ne.s32.totalorder %s1412_s5, %s1256_s9  ;;  %s50_s29 = int_to_ptr.vmem [resolvable:$true] %s49_s29 }
  0x25   :  { %p1260_p3 = scmp.lt.u32.totalorder %s1256_s9, %s1412_s5 }
  0x27   :  { %p1262_p4 = pnand %p1260_p3, %p1257_p2 }
  0x29   :  { %1265 = shalt.err (!%p1262_p4)
}
  0x2a   :  { %s1266_s14 = scalar_lea.vmem %s50_s29, 2048  ;;  %p1271_p6 = scmp.lt.s32.totalorder %s50_s29, %s50_s29 }
  0x2b   :  { %p1267_p5 = scmp.ne.s32.totalorder %s50_s29, %s1266_s14  ;;  %p1272_p7 = scmp.lt.s32.totalorder %s1266_s14, %s1266_s14 }
  0x2d   :  { %p1273_p8 = por %p1272_p7, %p1271_p6 }
  0x2f   :  { %p1274_p9 = pnand %p1273_p8, %p1267_p5 }
  0x31   :  { %1277 = shalt.err (!%p1274_p9)
}
  0x32   :  { %s1289_s1 = smov 64   ;;  %s1290_s15 = smov 4  }
  0x33   :  { %55 = dma.hbm_to_vmem [thread:$0]  %s1412_s5, 2048, %s50_s29, [#allocation5], %s1289_s1, %s1289_s1, %s1290_s15  }
  0x34   :  { %1278 = dma.done.wait [#allocation3], 2048  }
  0x35   :  { %1279 = vsyncadd [#allocation3], 4294965248 }
  0x36   :  { %1280 = dma.done.wait [#allocation5], 10240  }
  0x37   :  { %1281 = vsyncadd [#allocation5], 4294957056  ;;  %v1291_v0 = vmov 0.0   ;;  %v71_v1 = vld [vmem:[#allocation2 + $0x8] sm:$0xff]  ;;  %v70_v3 = vld [vmem:[#allocation2] sm:$0xff]  ;;  %vm108_vm0 = vcmask 261120  }
  0x38   :  { %179 = vmatprep.mubr.f32.mxu0 %v1291_v0  ;;  %v75_v2 = vld [vmem:[#allocation2 + $0x28] sm:$0xff]  ;;  %v74_v5 = vld [vmem:[#allocation2 + $0x20] sm:$0xff]  ;;  %v73_v12 = vld [vmem:[#allocation2 + $0x18] sm:$0xff] }
  0x39   :  { %v1062_v4 = vpack.c.bf16 %v75_v2, %v71_v1  ;;  %v79_v6 = vld [vmem:[#allocation2 + $0x48] sm:$0xff]  ;;  %v1064_v8 = vpack.c.bf16 %v74_v5, %v70_v3  ;;  %v78_v10 = vld [vmem:[#allocation2 + $0x40] sm:$0xff]  ;;  %v77_v13 = vld [vmem:[#allocation2 + $0x38] sm:$0xff] }
  0x3a   :  { %v83_v7 = vld [vmem:[#allocation2 + $0x68] sm:$0xff]  ;;  %v82_v11 = vld [vmem:[#allocation2 + $0x60] sm:$0xff]  ;;  %v72_v15 = vld [vmem:[#allocation2 + $0x10] sm:$0xff]  ;;  %v1070_v16 = vpack.c.bf16 %v77_v13, %v73_v12 }
  0x3b   :  { %v1066_v9 = vpack.c.bf16 %v83_v7, %v79_v6  ;;  %1063 = vmatprep.subr.bf16.mxu0 %v1062_v4  ;;  %v1068_v14 = vpack.c.bf16 %v82_v11, %v78_v10  ;;  %v76_v17 = vld [vmem:[#allocation2 + $0x30] sm:$0xff]  ;;  %v81_v18 = vld [vmem:[#allocation2 + $0x58] sm:$0xff]  ;;  %v68_v20 = vld [vmem:[%s1407_s0] sm:$0xff] }
  0x3c   :  { %1065 = vmatpush1.bf16.msra.mxu0 %v1064_v8  ;;  %v85_v19 = vld [vmem:[#allocation2 + $0x78] sm:$0xff]  ;;  %v1096_v21 = vld [vmem:[#allocation4 + $0x4] ss:$8 sps:$4 sm:$0xff]   ;;  %v80_v22 = vld [vmem:[#allocation2 + $0x50] sm:$0xff]  ;;  %v1072_v24 = vpack.c.bf16 %v76_v17, %v72_v15 }
  0x3d   :  { %1067 = vmatprep.subr.bf16.mxu0 %v1066_v9  ;;  %v1098_v23 = vld [vmem:[#allocation4] ss:$8 sps:$4 sm:$0xff]   ;;  %v84_v25 = vld [vmem:[#allocation2 + $0x70] sm:$0xff]  ;;  %677 = vmatprep.subr.bf16.mxu1 %v1096_v21  ;;  %v1074_v27 = vpack.c.bf16 %v85_v19, %v81_v18  ;;  %v1102_v29 = vld [vmem:[#allocation4 + $0x24] ss:$8 sps:$4 sm:$0xff]  }
  0x3e   :  { %v1099_v26 = vld [vmem:[#allocation4 + $0x14] ss:$8 sps:$4 sm:$0xff]   ;;  %678 = vmatpush1.bf16.msra.mxu1 %v1098_v23  ;;  %v1101_v28 = vld [vmem:[#allocation4 + $0x10] ss:$8 sps:$4 sm:$0xff]   ;;  %v69_v30 = vld [vmem:[%s1407_s0 + $0x8] sm:$0xff]  ;;  %v1076_v31 = vpack.c.bf16 %v84_v25, %v80_v22 }
  0x3f   :  { %679 = vmatprep.subr.bf16.mxu1 %v1099_v26  ;;  %v1106_v32 = vld [vmem:[#allocation4 + $0x104] ss:$8 sps:$4 sm:$0xff]   ;;  %v1107_v33 = vld [vmem:[#allocation4 + $0x20] ss:$8 sps:$4 sm:$0xff]   ;;  %v1108_v34 = vld [vmem:[#allocation4 + $0x34] ss:$8 sps:$4 sm:$0xff]  }
  0x40   :  { %1069 = vmatpush1.bf16.msra.mxu0 %v1068_v14  ;;  %v1104_v35 = vld [vmem:[#allocation4 + $0x100] ss:$8 sps:$4 sm:$0xff]   ;;  %v1112_v36 = vld [vmem:[#allocation4 + $0x114] ss:$8 sps:$4 sm:$0xff]   ;;  %v1113_v37 = vld [vmem:[#allocation4 + $0x30] ss:$8 sps:$4 sm:$0xff]  }
  0x41   :  { %1071 = vmatprep.subr.bf16.mxu0 %v1070_v16  ;;  %v1114_v38 = vld [vmem:[#allocation4 + $0x44] ss:$8 sps:$4 sm:$0xff]   ;;  %v1110_v39 = vld [vmem:[#allocation4 + $0x110] ss:$8 sps:$4 sm:$0xff]   ;;  %v1119_v41 = vld [vmem:[#allocation4 + $0x40] ss:$8 sps:$4 sm:$0xff]  }
  0x42   :  { %680 = vmatpush1.bf16.msra.mxu1 %v1101_v28  ;;  %v1118_v40 = vld [vmem:[#allocation4 + $0x124] ss:$8 sps:$4 sm:$0xff]   ;;  %v1120_v42 = vld [vmem:[#allocation4 + $0x54] ss:$8 sps:$4 sm:$0xff]   ;;  %v1116_v43 = vld [vmem:[#allocation4 + $0x120] ss:$8 sps:$4 sm:$0xff]   ;;  %v88_v28 = vlaneseq }
  0x43   :  { %955 = vmatmul.mubr.msk.f32.vlgmr.msra.gmra.mrb[0].mxu0 %vm108_vm0, %v68_v20  ;;  %681 = vmatprep.subr.bf16.mxu1 %v1102_v29  ;;  %v1124_v44 = vld [vmem:[#allocation4 + $0x134] ss:$8 sps:$4 sm:$0xff]   ;;  %v1125_v45 = vld [vmem:[#allocation4 + $0x50] ss:$8 sps:$4 sm:$0xff]   ;;  %v1126_v46 = vld [vmem:[#allocation4 + $0x64] ss:$8 sps:$4 sm:$0xff]  }
  0x44   :  { %1073 = vmatpush1.bf16.msra.mxu0 %v1072_v24  ;;  %185 = vmatprep.mubr.f32.mxu0 %v1291_v0  ;;  %v1122_v47 = vld [vmem:[#allocation4 + $0x130] ss:$8 sps:$4 sm:$0xff]   ;;  %v1130_v48 = vld [vmem:[#allocation4 + $0x144] ss:$8 sps:$4 sm:$0xff]   ;;  %v1131_v49 = vld [vmem:[#allocation4 + $0x60] ss:$8 sps:$4 sm:$0xff]  }
  0x45   :  { %1075 = vmatprep.subr.bf16.mxu0 %v1074_v27  ;;  %v1132_v50 = vld [vmem:[#allocation4 + $0x74] ss:$8 sps:$4 sm:$0xff]   ;;  %v1128_v51 = vld [vmem:[#allocation4 + $0x140] ss:$8 sps:$4 sm:$0xff]   ;;  %v1137_v53 = vld [vmem:[#allocation4 + $0x70] ss:$8 sps:$4 sm:$0xff]  }
  0x46   :  { %682 = vmatpush1.bf16.msra.mxu1 %v1107_v33  ;;  %v1136_v52 = vld [vmem:[#allocation4 + $0x154] ss:$8 sps:$4 sm:$0xff]   ;;  %v1138_v54 = vld [vmem:[#allocation4 + $0x84] ss:$8 sps:$4 sm:$0xff]   ;;  %v1134_v55 = vld [vmem:[#allocation4 + $0x150] ss:$8 sps:$4 sm:$0xff]  }
  0x47   :  { %956 = vmatmul.mubr.msk.f32.gmra.mrb[2].mxu0 %vm108_vm0, %v69_v30  ;;  %683 = vmatprep.subr.bf16.mxu1 %v1108_v34  ;;  %v1142_v56 = vld [vmem:[#allocation4 + $0x164] ss:$8 sps:$4 sm:$0xff]   ;;  %v1143_v57 = vld [vmem:[#allocation4 + $0x80] ss:$8 sps:$4 sm:$0xff]   ;;  %v1144_v59 = vld [vmem:[#allocation4 + $0x94] ss:$8 sps:$4 sm:$0xff]  }
  0x48   :  { %1077 = vmatpush1.bf16.msra.mxu0 %v1076_v31  ;;  %256 = vmatprep.mubr.f32.mxu0 %v1291_v0  ;;  %v1140_v58 = vld [vmem:[#allocation4 + $0x160] ss:$8 sps:$4 sm:$0xff]   ;;  %v1148_v60 = vld [vmem:[#allocation4 + $0x174] ss:$8 sps:$4 sm:$0xff]   ;;  %v1149_v61 = vld [vmem:[#allocation4 + $0x90] ss:$8 sps:$4 sm:$0xff]  }
  0x49   :  { %720 = vmatprep.subr.bf16.mxu0 %v1106_v32  ;;  %v1150_v62 = vld [vmem:[#allocation4 + $0xa4] ss:$8 sps:$4 sm:$0xff]   ;;  %v1146_v63 = vld [vmem:[#allocation4 + $0x170] ss:$8 sps:$4 sm:$0xff]   ;;  %v1155_v1 = vld [vmem:[#allocation4 + $0xa0] ss:$8 sps:$4 sm:$0xff]  }
  0x4a   :  { %684 = vmatpush1.bf16.msra.mxu1 %v1113_v37  ;;  %v1156_v2 = vld [vmem:[#allocation4 + $0xb4] ss:$8 sps:$4 sm:$0xff]   ;;  %v1152_v3 = vld [vmem:[#allocation4 + $0x180] ss:$8 sps:$4 sm:$0xff]   ;;  %v1161_v5 = vld [vmem:[#allocation4 + $0xb0] ss:$8 sps:$4 sm:$0xff]  }
  0x4b   :  { %957 = vmatmul.mubr.msk.f32.vlgmr.msra.gmra.mrb[4].mxu0 %vm108_vm0, %v68_v20  ;;  %685 = vmatprep.subr.bf16.mxu1 %v1114_v38  ;;  %v1160_v4 = vld [vmem:[#allocation4 + $0x194] ss:$8 sps:$4 sm:$0xff]   ;;  %v1162_v6 = vld [vmem:[#allocation4 + $0xc4] ss:$8 sps:$4 sm:$0xff]   ;;  %v1158_v7 = vld [vmem:[#allocation4 + $0x190] ss:$8 sps:$4 sm:$0xff]  }
  0x4c   :  { %262 = vmatprep.mubr.f32.mxu0 %v1291_v0  ;;  %721 = vmatpush1.bf16.msra.mxu0 %v1104_v35  ;;  %v1154_v0 = vld [vmem:[#allocation4 + $0x184] ss:$8 sps:$4 sm:$0xff]   ;;  %v1167_v9 = vld [vmem:[#allocation4 + $0xc0] ss:$8 sps:$4 sm:$0xff]   ;;  %v1168_v11 = vld [vmem:[#allocation4 + $0xd4] ss:$8 sps:$4 sm:$0xff]  }
  0x4d   :  { %722 = vmatprep.subr.bf16.mxu0 %v1112_v36  ;;  %v1166_v8 = vld [vmem:[#allocation4 + $0x1a4] ss:$8 sps:$4 sm:$0xff]   ;;  %v1164_v10 = vld [vmem:[#allocation4 + $0x1a0] ss:$8 sps:$4 sm:$0xff]   ;;  %v1172_v12 = vld [vmem:[#allocation4 + $0x1b4] ss:$8 sps:$4 sm:$0xff]  }
  0x4e   :  { %686 = vmatpush1.bf16.msra.mxu1 %v1119_v41  ;;  %v1170_v13 = vld [vmem:[#allocation4 + $0x1b0] ss:$8 sps:$4 sm:$0xff]   ;;  %v1174_v15 = vld [vmem:[#allocation4 + $0xe4] ss:$8 sps:$4 sm:$0xff]   ;;  %v1176_v17 = vld [vmem:[#allocation4 + $0x1c0] ss:$8 sps:$4 sm:$0xff]  }
  0x4f   :  { %958 = vmatmul.mubr.msk.f32.gmra.mrb[6].mxu0 %vm108_vm0, %v69_v30  ;;  %687 = vmatprep.subr.bf16.mxu1 %v1120_v42  ;;  %v1173_v14 = vld [vmem:[#allocation4 + $0xd0] ss:$8 sps:$4 sm:$0xff]   ;;  %v1178_v16 = vld [vmem:[#allocation4 + $0x1c4] ss:$8 sps:$4 sm:$0xff]   ;;  %v1179_v18 = vld [vmem:[#allocation4 + $0xe0] ss:$8 sps:$4 sm:$0xff]  }
  0x50   :  { %723 = vmatpush1.bf16.msra.mxu0 %v1110_v39  ;;  %v1180_v19 = vld [vmem:[#allocation4 + $0xf4] ss:$8 sps:$4 sm:$0xff]   ;;  %v1182_v21 = vld [vmem:[#allocation4 + $0x1d0] ss:$8 sps:$4 sm:$0xff]   ;;  %v1188_v23 = vld [vmem:[#allocation4 + $0x1e4] ss:$8 sps:$4 sm:$0xff]  }
  0x51   :  { %724 = vmatprep.subr.bf16.mxu0 %v1118_v40  ;;  %v1184_v20 = vld [vmem:[#allocation4 + $0x1d4] ss:$8 sps:$4 sm:$0xff]   ;;  %v1185_v22 = vld [vmem:[#allocation4 + $0xf0] ss:$8 sps:$4 sm:$0xff]   ;;  %v1186_v24 = vld [vmem:[#allocation4 + $0x1e0] ss:$8 sps:$4 sm:$0xff]  }
  0x52   :  { %688 = vmatpush1.bf16.msra.mxu1 %v1125_v45  ;;  %v1191_v25 = vld [vmem:[#allocation4 + $0x1f4] ss:$8 sps:$4 sm:$0xff]   ;;  %v1189_v26 = vld [vmem:[#allocation4 + $0x1f0] ss:$8 sps:$4 sm:$0xff]   ;;  %v1192_v27 = vld [vmem:[#allocation6 + $0x40] sm:$0xff]   ;;  %v1378_v29 = vshrl.u32 %v88_v28, 7 }
  0x53   :  { %689 = vmatprep.subr.bf16.mxu1 %v1126_v46  ;;  %v86_v31 = vld [vmem:[%s1409_s2] sm:$0xf] }
  0x54   :  { %725 = vmatpush1.bf16.msra.mxu0 %v1116_v43  ;;  %v90_v30 = vsub.s32 0, %v1378_v29  ;;  %v94_v32 = vsub.s32 1, %v1378_v29  ;;  %v98_v38 = vsub.s32 2, %v1378_v29  ;;  %v102_v41 = vsub.s32 3, %v1378_v29 }
  0x55   :  { %726 = vmatprep.subr.bf16.mxu0 %v1124_v44 }
  0x56   :  { %690 = vmatpush1.bf16.msra.mxu1 %v1131_v49  ;;  %v91_v33 = vrot.slane %v86_v31, %v90_v30  ;;  %v95_v35 = vrot.slane %v86_v31, %v94_v32 }
  0x57   :  { %691 = vmatprep.subr.bf16.mxu1 %v1132_v50 }
  0x58   :  { %727 = vmatpush1.bf16.msra.mxu0 %v1122_v47  ;;  %v99_v47 = vrot.slane %v86_v31, %v98_v38 }
  0x59   :  { %728 = vmatprep.subr.bf16.mxu0 %v1130_v48 }
  0x5a   :  { %692 = vmatpush1.bf16.msra.mxu1 %v1137_v53 }
  0x5b   :  { %693 = vmatprep.subr.bf16.mxu1 %v1138_v54 }
  0x5c   :  { %729 = vmatpush1.bf16.msra.mxu0 %v1128_v51  ;;  %v103_v51 = vrot.slane %v86_v31, %v102_v41 }
  0x5d   :  { %730 = vmatprep.subr.bf16.mxu0 %v1136_v52 }
  0x5e   :  { %694 = vmatpush1.bf16.msra.mxu1 %v1143_v57  ;;  %v1194_v57 = vld [vmem:[#allocation6 + $0x48] sm:$0xff]  }
  0x5f   :  { %695 = vmatprep.subr.bf16.mxu1 %v1144_v59 }
  0x60   :  { %731 = vmatpush1.bf16.msra.mxu0 %v1134_v55  ;;  %v1193_v55 = vld [vmem:[#allocation6] sm:$0xff]  }
  0x61   :  { %732 = vmatprep.subr.bf16.mxu0 %v1142_v56 }
  0x62   :  { %696 = vmatpush1.bf16.msra.mxu1 %v1149_v61 }
  0x63   :  { %697 = vmatprep.subr.bf16.mxu1 %v1150_v62 }
  0x64   :  { %733 = vmatpush1.bf16.msra.mxu0 %v1140_v58 }
  0x65   :  { %734 = vmatprep.subr.bf16.mxu0 %v1148_v60 }
  0x66   :  { %698 = vmatpush1.bf16.msra.mxu1 %v1155_v1 }
  0x67   :  { %699 = vmatprep.subr.bf16.mxu1 %v1156_v2  ;;  %v1196_v2 = vld [vmem:[#allocation6 + $0x50] sm:$0xff]  }
  0x68   :  { %735 = vmatpush1.bf16.msra.mxu0 %v1146_v63  ;;  %v1195_v63 = vld [vmem:[#allocation6 + $0x8] sm:$0xff]  }
  0x69   :  { %736 = vmatprep.subr.bf16.mxu0 %v1154_v0 }
  0x6a   :  { %700 = vmatpush1.bf16.msra.mxu1 %v1161_v5 }
  0x6b   :  { %701 = vmatprep.subr.bf16.mxu1 %v1162_v6 }
  0x6c   :  { %737 = vmatpush1.bf16.msra.mxu0 %v1152_v3 }
  0x6d   :  { %738 = vmatprep.subr.bf16.mxu0 %v1160_v4 }
  0x6e   :  { %702 = vmatpush1.bf16.msra.mxu1 %v1167_v9  ;;  %v1199_v9 = vld [vmem:[#allocation6 + $0x18] sm:$0xff]  }
  0x6f   :  { %703 = vmatprep.subr.bf16.mxu1 %v1168_v11  ;;  %v1201_v11 = vld [vmem:[#allocation6 + $0x20] sm:$0xff]  }
  0x70   :  { %739 = vmatpush1.bf16.msra.mxu0 %v1158_v7  ;;  %v1197_v7 = vld [vmem:[#allocation6 + $0x10] sm:$0xff]  }
  0x71   :  { %740 = vmatprep.subr.bf16.mxu0 %v1166_v8  ;;  %v1198_v8 = vld [vmem:[#allocation6 + $0x58] sm:$0xff]  }
  0x72   :  { %704 = vmatpush1.bf16.msra.mxu1 %v1173_v14  ;;  %v1204_v14 = vld [vmem:[#allocation6 + $0x70] sm:$0xff]  }
  0x73   :  { %705 = vmatprep.subr.bf16.mxu1 %v1174_v15  ;;  %v1205_v15 = vld [vmem:[#allocation6 + $0x30] sm:$0xff]  }
  0x74   :  { %741 = vmatpush1.bf16.msra.mxu0 %v1164_v10  ;;  %v1200_v10 = vld [vmem:[#allocation6 + $0x60] sm:$0xff]  }
  0x75   :  { %742 = vmatprep.subr.bf16.mxu0 %v1172_v12  ;;  %v1202_v12 = vld [vmem:[#allocation6 + $0x68] sm:$0xff]  }
  0x76   :  { %706 = vmatpush1.bf16.msra.mxu1 %v1179_v18  ;;  %v345_v18 = vld [vmem:[%s1411_s4] sm:$0x3] }
  0x77   :  { %707 = vmatprep.subr.bf16.mxu1 %v1180_v19 }
  0x78   :  { %743 = vmatpush1.bf16.msra.mxu0 %v1170_v13  ;;  %v1203_v13 = vld [vmem:[#allocation6 + $0x28] sm:$0xff]  }
  0x79   :  { %744 = vmatprep.subr.bf16.mxu0 %v1178_v16  ;;  %v1206_v16 = vld [vmem:[#allocation6 + $0x78] sm:$0xff]  }
  0x7a   :  { %708 = vmatpush1.bf16.msra.mxu1 %v1185_v22  ;;  %v350_v22 = vrot.slane %v345_v18, %v90_v30 }
  0x7b   :  { %1040 = vmatprep.subr.bf16.mxu1 %v1192_v27 }
  0x7c   :  { %745 = vmatpush1.bf16.msra.mxu0 %v1176_v17  ;;  %v1207_v17 = vld [vmem:[#allocation6 + $0x38] sm:$0xff]  }
  0x7d   :  { %746 = vmatprep.subr.bf16.mxu0 %v1184_v20 }
  0x80   :  { %747 = vmatpush1.bf16.msra.mxu0 %v1182_v21 }
  0x81   :  { %748 = vmatprep.subr.bf16.mxu0 %v1188_v23 }
  0x84   :  { %749 = vmatpush1.bf16.msra.mxu0 %v1186_v24  ;;  %v354_v24 = vrot.slane %v345_v18, %v94_v32  ;;  %v1023_v32 = vld [vmem:[%s1413_s6] ss:$0 sm:$0xff] }
  0x85   :  { %750 = vmatprep.subr.bf16.mxu0 %v1191_v25 }
  0x88   :  { %751 = vmatpush1.bf16.msra.mxu0 %v1189_v26 }
 0x116   :  { %v181_v34 = vpop.f32.mrb[0].mxu0 }
 0x117   :  { %v183_v36 = vpop.f32.mrb[1].mxu0  ;;  %v182_v37 = vadd.f32 %v181_v34, %v91_v33 }
 0x118   :  { %v184_v39 = vadd.f32 %v183_v36, %v95_v35 }
 0x119   :  { %v269_v45 = vmax.f32 %v182_v37, 0.0 }
 0x11a   :  { %v187_v40 = vpop.f32.mrb[2].mxu0  ;;  %v270_v48 = vmax.f32 %v184_v39, 0.0 }
 0x11b   :  { %v188_v42 = vadd.f32 %v187_v40, %v91_v33  ;;  %v189_v43 = vpop.f32.mrb[3].mxu0 }
 0x11c   :  { %v190_v44 = vadd.f32 %v189_v43, %v95_v35 }
 0x11d   :  { %v273_v46 = vmax.f32 %v188_v42, 0.0 }
 0x11e   :  { %v274_v49 = vmax.f32 %v190_v44, 0.0  ;;  %v258_v50 = vpop.f32.mrb[4].mxu0 }
 0x11f   :  { %v277_v52 = vpack.c.bf16 %v273_v46, %v269_v45  ;;  %v260_v53 = vpop.f32.mrb[5].mxu0  ;;  %v259_v56 = vadd.f32 %v258_v50, %v99_v47 }
 0x120   :  { %v278_v54 = vpack.c.bf16 %v274_v49, %v270_v48  ;;  %v261_v58 = vadd.f32 %v260_v53, %v103_v51 }
 0x121   :  { %v271_v0 = vmax.f32 %v259_v56, 0.0 }
 0x122   :  { %v264_v59 = vpop.f32.mrb[6].mxu0  ;;  %709 = vmatprep.mubr.bf16.mxu1 %v278_v54  ;;  %v272_v3 = vmax.f32 %v261_v58, 0.0 }
 0x123   :  { %v265_v60 = vadd.f32 %v264_v59, %v99_v47  ;;  %v266_v61 = vpop.f32.mrb[7].mxu0  ;;  %710 = vmatmul.mubr.bf16.vlgmr.msra.gmra.mrb[0].mxu1 %v277_v52 }
 0x124   :  { %v267_v62 = vadd.f32 %v266_v61, %v103_v51  ;;  %1041 = vmatpush3.bf16.msra.mxu1 %v1193_v55 }
 0x125   :  { %v275_v1 = vmax.f32 %v265_v60, 0.0  ;;  %1042 = vmatprep.subr.bf16.mxu1 %v1194_v57 }
 0x126   :  { %v276_v4 = vmax.f32 %v267_v62, 0.0 }
 0x127   :  { %v279_v5 = vpack.c.bf16 %v275_v1, %v271_v0 }
 0x128   :  { %v280_v6 = vpack.c.bf16 %v276_v4, %v272_v3  ;;  %1043 = vmatpush3.bf16.msra.mxu1 %v1195_v63 }
 0x129   :  { %1044 = vmatprep.subr.bf16.mxu1 %v1196_v2 }
 0x12a   :  { %752 = vmatprep.mubr.bf16.mxu0 %v280_v6 }
 0x12b   :  { %753 = vmatmul.mubr.bf16.vlgmr.msra.gmra.mrb[8].mxu0 %v279_v5 }
 0x12c   :  { %1045 = vmatpush3.bf16.msra.mxu1 %v1197_v7 }
 0x12d   :  { %1046 = vmatprep.subr.bf16.mxu1 %v1198_v8 }
 0x130   :  { %1047 = vmatpush3.bf16.msra.mxu1 %v1199_v9 }
 0x131   :  { %1048 = vmatprep.subr.bf16.mxu1 %v1200_v10 }
 0x134   :  { %1049 = vmatpush3.bf16.msra.mxu1 %v1201_v11 }
 0x135   :  { %1050 = vmatprep.subr.bf16.mxu1 %v1202_v12 }
 0x138   :  { %1051 = vmatpush3.bf16.msra.mxu1 %v1203_v13 }
 0x139   :  { %1052 = vmatprep.subr.bf16.mxu1 %v1204_v14 }
 0x13c   :  { %1053 = vmatpush3.bf16.msra.mxu1 %v1205_v15 }
 0x13d   :  { %1054 = vmatprep.subr.bf16.mxu1 %v1206_v16 }
 0x140   :  { %1055 = vmatpush3.bf16.msra.mxu1 %v1207_v17 }
 0x1f6   :  { %v711_v19 = vpop.f32.mrb[0].mxu1 }
 0x1f7   :  { %v713_v20 = vpop.f32.mrb[1].mxu1  ;;  %v712_v25 = vadd.f32 %v711_v19, %v350_v22 }
 0x1f8   :  { %v715_v21 = vpop.f32.mrb[2].mxu1  ;;  %v714_v26 = vadd.f32 %v713_v20, %v354_v24 }
 0x1f9   :  { %v717_v23 = vpop.f32.mrb[3].mxu1  ;;  %v716_v28 = vadd.f32 %v715_v21, %v350_v22 }
 0x1fa   :  { %v718_v34 = vadd.f32 %v717_v23, %v354_v24 }
 0x1fe   :  { %v754_v27 = vpop.f32.mrb[8].mxu0 }
 0x1ff   :  { %v755_v31 = vadd.f32 %v754_v27, %v712_v25  ;;  %v756_v33 = vpop.f32.mrb[9].mxu0 }
 0x200   :  { %v757_v35 = vadd.f32 %v756_v33, %v714_v26  ;;  %v758_v36 = vpop.f32.mrb[10].mxu0 }
 0x201   :  { %v759_v37 = vadd.f32 %v758_v36, %v716_v28  ;;  %v760_v38 = vpop.f32.mrb[11].mxu0  ;;  %v763_v40 = vmax.f32 %v755_v31, 0.0 }
 0x202   :  { %v761_v39 = vadd.f32 %v760_v38, %v718_v34  ;;  %v764_v42 = vmax.f32 %v757_v35, 0.0 }
 0x203   :  { %v765_v41 = vmax.f32 %v759_v37, 0.0 }
 0x204   :  { %v766_v30 = vmax.f32 %v761_v39, 0.0 }
 0x205   :  { %v767_v43 = vpack.c.bf16 %v765_v41, %v763_v40 }
 0x206   :  { %v768_v44 = vpack.c.bf16 %v766_v30, %v764_v42 }
 0x208   :  { %936 = vmatprep.mubr.bf16.mxu1 %v768_v44 }
 0x209   :  { %937 = vmatmul.mubr.bf16.vlgmr.msra.gmra.mrb[4].mxu1 %v767_v43 }
 0x2dc   :  { %v1056_v29 = vpop.f32.mrb[4].mxu1 }
 0x2dd   :  { %v1057_v45 = vpop.f32.mrb[5].mxu1 }
 0x2de   :  { %v1058_v46 = vadd.f32 %v1057_v45, %v1056_v29  ;;  %v1059_v47 = vpop.f32.mrb[6].mxu1 }
 0x2df   :  { %v1060_v48 = vpop.f32.mrb[7].mxu1 }
 0x2e0   :  { %v939_v49 = vadd.f32 %v1058_v46, %v1023_v32  ;;  %v1061_v50 = vadd.f32 %v1060_v48, %v1059_v47 }
 0x2e2   :  { %1208 = vtanh.f32 %v939_v49  ;;  %v942_v51 = vadd.f32 %v1061_v50, %v1023_v32 }
 0x2e4   :  { %1210 = vtanh.f32 %v942_v51 }
 0x2ec   :  { %v1209_v52 = vpop.eup %1208 }
 0x2ed   :  { %947 = vst [vmem:[%s1414_s7] sm:$0xff] %v1209_v52 }
 0x2ee   :  { %v1211_v53 = vpop.eup %1210 }
 0x2ef   :  { %948 = vst [vmem:[%s1414_s7 + $0x8] sm:$0xff] %v1211_v53 }
 0x2f0   :  { %953 = vsyncpa [#allocation3], 1 }
 0x2f1   :  { %954 = vsyncpa [#allocation5], 1 }

</bundles_post_ra>
